<compile_context>
chip_gen: v7x
topology: tpu7x:2x2x1
jax: 0.10.0
libtpu: 0.0.40
codegen_flags: <defaults>
</compile_context>

<pallas_src>
import jax
import jax.numpy as jnp
from jax.experimental import pallas as pl
from jax.experimental.pallas import tpu as pltpu

LANE = 128
BF16_SUBLANE = 16   # bf16 packed sublane tile


def _round_up(n, m):
    return ((n + m - 1) // m) * m


def _hard_swish(x):
    # f_hard_swish(x) = relu6(x + 3) / 6 * x   (kept in f32: VPU-only math)
    return jnp.clip(x + 3.0, 0.0, 6.0) * (1.0 / 6.0) * x


def actor_kernel(x_ref,
                 w0_ref, b0_ref,
                 w1_ref, b1_ref,
                 w2s_ref, b2_ref,
                 woab_ref, woc_ref, bo_ref,
                 o_ref,
                 cat_ref):
    mp = w1_ref.shape[0]                                       # padded mid dim

    x0 = x_ref[...]                                            # (TB, Sp) bf16

    # dense0 -> hard_swish   (K = Sp, 16-sublane contraction)
    h0 = jnp.dot(x0, w0_ref[...], preferred_element_type=jnp.float32) + b0_ref[...]
    x1b = _hard_swish(h0).astype(jnp.bfloat16)                 # (TB, Mp)
    cat_ref[:, 0:mp] = x1b                                     # 128-aligned vst

    # dense1 -> hard_swish
    h1 = jnp.dot(x1b, w1_ref[...], preferred_element_type=jnp.float32) + b1_ref[...]
    y1b = _hard_swish(h1).astype(jnp.bfloat16)                 # (TB, Mp)
    cat_ref[:, mp:2 * mp] = y1b                                # 128-aligned vst

    cat = cat_ref[...]                                         # (TB, 2*Mp) bf16

    # dense2 on cat(x1, y1): single K=2*Mp contraction against row-stacked w2.
    h2 = jnp.dot(cat, w2s_ref[...], preferred_element_type=jnp.float32) + b2_ref[...]
    y2b = _hard_swish(h2).astype(jnp.bfloat16)                 # (TB, N2p)

    # dense_o on cat(x1, y1, y2): K=2*Mp dot + K=N2p accumulating dot, tanh.
    # dropout = identity (inference).
    ho = (jnp.dot(cat, woab_ref[...], preferred_element_type=jnp.float32)
          + jnp.dot(y2b, woc_ref[...], preferred_element_type=jnp.float32)
          + bo_ref[...])
    o_ref[...] = jnp.tanh(ho).astype(o_ref.dtype)              # lane-dense bf16 store


def _pad_to(a, rows, cols, dtype):
    out = jnp.zeros((rows, cols), dtype)
    return out.at[:a.shape[0], :a.shape[1]].set(a.astype(dtype))


def prepare_params(params, state_dim, mid_dim, action_dim):
    """One-time (per policy update) weight preparation.

    Splits dense2 / dense_o along their input dim and re-lays the pieces onto
    the padded [x1 | y1] lane layout (row-stacked, so the kernel can feed the
    MXU K=2*Mp contractions), zero-pads every feature dim (state -> 16-sublane
    tile, others -> 128 lanes), casts weights to bf16 and biases to f32.
    Cache the returned tuple on device and reuse it for every actor call.
    """
    w0, b0, w1, b1, w2, b2, wo, bo = params
    Sp = _round_up(state_dim, BF16_SUBLANE)     # contraction dim: no 128 pad needed
    Mp = _round_up(mid_dim, LANE)
    N2p = _round_up(2 * mid_dim, LANE)
    Ap = _round_up(action_dim, LANE)

    w0p = _pad_to(w0, Sp, Mp, jnp.bfloat16)
    b0p = _pad_to(b0, 1, Mp, jnp.float32)
    w1p = _pad_to(w1, Mp, Mp, jnp.bfloat16)
    b1p = _pad_to(b1, 1, Mp, jnp.float32)

    # dense2 weight rows re-laid onto [x1(0:Mp) | y1(Mp:2Mp)] padded layout.
    w2s = jnp.zeros((2 * Mp, N2p), jnp.bfloat16)
    w2s = w2s.at[:mid_dim, :2 * mid_dim].set(w2[:mid_dim].astype(jnp.bfloat16))
    w2s = w2s.at[Mp:Mp + mid_dim, :2 * mid_dim].set(
        w2[mid_dim:2 * mid_dim].astype(jnp.bfloat16))
    b2p = _pad_to(b2, 1, N2p, jnp.float32)

    # dense_o: (x1|y1) part row-stacked, y2 part separate.
    woab = jnp.zeros((2 * Mp, Ap), jnp.bfloat16)
    woab = woab.at[:mid_dim, :action_dim].set(wo[:mid_dim].astype(jnp.bfloat16))
    woab = woab.at[Mp:Mp + mid_dim, :action_dim].set(
        wo[mid_dim:2 * mid_dim].astype(jnp.bfloat16))
    wocp = _pad_to(wo[2 * mid_dim:4 * mid_dim], N2p, Ap, jnp.bfloat16)
    bop = _pad_to(bo, 1, Ap, jnp.float32)

    return (w0p, b0p, w1p, b1p, w2s, b2p, woab, wocp, bop)


def actor_forward(x, prepared, action_dim, *, block_batch=1024):
    """x: (B, state_dim) f32; prepared: output of prepare_params (cached)."""
    batch, state_dim = x.shape
    w0p, b0p, w1p, b1p, w2s, b2p, woab, wocp, bop = prepared
    Sp, Mp = w0p.shape
    Ap = bop.shape[1]

    # Adaptive batch tile: even split, rounded to the bf16 sublane tile, so a
    # batch just over block_batch does not create a nearly-empty extra tile.
    n_tiles = max(1, pl.cdiv(batch, block_batch))
    TB = _round_up(pl.cdiv(batch, n_tiles), BF16_SUBLANE)
    Bp = _round_up(batch, TB)

    xp = jnp.zeros((Bp, Sp), jnp.bfloat16).at[:batch, :state_dim].set(
        x.astype(jnp.bfloat16))

    x_spec = pl.BlockSpec((TB, Sp), lambda i: (i, 0))
    out_spec = pl.BlockSpec((TB, Ap), lambda i: (i, 0))
    # Weights/biases: full-array blocks, constant block index -> VMEM-resident
    # across batch tiles (no re-DMA per grid step).
    weight_specs = [pl.BlockSpec(a.shape, lambda i: (0, 0)) for a in prepared]

    out_padded = pl.pallas_call(
        actor_kernel,
        out_shape=jax.ShapeDtypeStruct((Bp, Ap), jnp.bfloat16),
        grid=(Bp // TB,),
        in_specs=[x_spec] + weight_specs,
        out_specs=out_spec,
        scratch_shapes=[pltpu.VMEM((TB, 2 * Mp), jnp.bfloat16)],  # [x1|y1] slab
        compiler_params=pltpu.CompilerParams(
            dimension_semantics=("parallel",),
            vmem_limit_bytes=32 * 1024 * 1024),
    )(xp, *prepared)

    return out_padded[:batch, :action_dim].astype(jnp.float32)


def init_params(key, state_dim, mid_dim, action_dim):
    """Deterministic init mimicking nn.Linear (uniform +-1/sqrt(fan_in)).
    Weights stored as (in_dim, out_dim); biases as (1, out_dim). f32."""
    dims = [
        (state_dim, mid_dim),        # dense0
        (mid_dim, mid_dim),          # dense1
        (2 * mid_dim, 2 * mid_dim),  # dense2
        (4 * mid_dim, action_dim),   # dense_o
    ]
    params = []
    for (fan_in, fan_out) in dims:
        key, kw, kb = jax.random.split(key, 3)
        bound = 1.0 / (fan_in ** 0.5)
        w = jax.random.uniform(kw, (fan_in, fan_out), jnp.float32, -bound, bound)
        b = jax.random.uniform(kb, (1, fan_out), jnp.float32, -bound, bound)
        params += [w, b]
    return tuple(params)


def actor_reference(x, params):
    """Pure-JAX f32 reference matching the PyTorch forward (noise_std=0)."""
    w0, b0, w1, b1, w2, b2, wo, bo = params
    x1 = _hard_swish(x @ w0 + b0)
    x2 = jnp.concatenate([x1, _hard_swish(x1 @ w1 + b1)], axis=1)
    x3 = jnp.concatenate([x2, _hard_swish(x2 @ w2 + b2)], axis=1)
    return jnp.tanh(x3 @ wo + bo)


if __name__ == "__main__":
    batch, state_dim, mid_dim, action_dim = 8, 16, 32, 8

    key = jax.random.PRNGKey(0)
    key, kx = jax.random.split(key)
    x = jax.random.normal(kx, (batch, state_dim), jnp.float32)
    params = init_params(key, state_dim, mid_dim, action_dim)

    # Hoisted one-time weight preparation (re-done only on policy update).
    prepared = jax.block_until_ready(
        prepare_params(params, state_dim, mid_dim, action_dim))

    actor = jax.jit(actor_forward, static_argnums=(2,))
    out = jax.block_until_ready(actor(x, prepared, action_dim))

    ref = actor_reference(x, params)
    assert out.shape == (batch, action_dim)
    # bf16 MXU operands and bf16 output store: compare against the f32
    # reference with a loosened tolerance (outputs are tanh-bounded in [-1,1]).
    assert jnp.allclose(out, ref, atol=3e-2, rtol=3e-2), (
        float(jnp.max(jnp.abs(out - ref))))

    print("KERNEL_OK")
</pallas_src>

<mosaic_0001>
module attributes {stable_mosaic.version = 11 : i64} {
  func.func @actor_kernel(%arg0: i32, %arg1: memref<16x16xbf16, #tpu.memory_space<vmem>>, %arg2: memref<16x128xbf16, #tpu.memory_space<vmem>>, %arg3: memref<1x128xf32, #tpu.memory_space<vmem>>, %arg4: memref<128x128xbf16, #tpu.memory_space<vmem>>, %arg5: memref<1x128xf32, #tpu.memory_space<vmem>>, %arg6: memref<256x128xbf16, #tpu.memory_space<vmem>>, %arg7: memref<1x128xf32, #tpu.memory_space<vmem>>, %arg8: memref<256x128xbf16, #tpu.memory_space<vmem>>, %arg9: memref<128x128xbf16, #tpu.memory_space<vmem>>, %arg10: memref<1x128xf32, #tpu.memory_space<vmem>>, %arg11: memref<16x128xbf16, #tpu.memory_space<vmem>>, %arg12: memref<16x256xbf16, #tpu.memory_space<vmem>>) attributes {dimension_semantics = [#tpu.dimension_semantics<parallel>], iteration_bounds = array<i64: 1>, scalar_prefetch = 0 : i64, scratch_operands = 1 : i64, tpu.core_type = #tpu.core_type<tc>, window_params = [{transform_indices = @transform_0, window_bounds = array<i64: 16, 16>}, {pipeline_mode = #tpu.pipeline_mode<synchronous>, transform_indices = @transform_1, window_bounds = array<i64: 16, 128>}, {pipeline_mode = #tpu.pipeline_mode<synchronous>, transform_indices = @transform_2, window_bounds = array<i64: 1, 128>}, {pipeline_mode = #tpu.pipeline_mode<synchronous>, transform_indices = @transform_3, window_bounds = array<i64: 128, 128>}, {pipeline_mode = #tpu.pipeline_mode<synchronous>, transform_indices = @transform_4, window_bounds = array<i64: 1, 128>}, {pipeline_mode = #tpu.pipeline_mode<synchronous>, transform_indices = @transform_5, window_bounds = array<i64: 256, 128>}, {pipeline_mode = #tpu.pipeline_mode<synchronous>, transform_indices = @transform_6, window_bounds = array<i64: 1, 128>}, {pipeline_mode = #tpu.pipeline_mode<synchronous>, transform_indices = @transform_7, window_bounds = array<i64: 256, 128>}, {pipeline_mode = #tpu.pipeline_mode<synchronous>, transform_indices = @transform_8, window_bounds = array<i64: 128, 128>}, {pipeline_mode = #tpu.pipeline_mode<synchronous>, transform_indices = @transform_9, window_bounds = array<i64: 1, 128>}, {transform_indices = @transform_10, window_bounds = array<i64: 16, 128>}]} {
    %c0 = arith.constant 0 : index
    %c0_0 = arith.constant 0 : index
    %0 = vector.load %arg1[%c0, %c0_0] : memref<16x16xbf16, #tpu.memory_space<vmem>>, vector<16x16xbf16>
    %c0_1 = arith.constant 0 : index
    %c0_2 = arith.constant 0 : index
    %1 = vector.load %arg2[%c0_1, %c0_2] : memref<16x128xbf16, #tpu.memory_space<vmem>>, vector<16x128xbf16>
    %cst = arith.constant dense<0.000000e+00> : vector<16x128xf32>
    %2 = tpu.matmul %0, %1, %cst {dimension_numbers = #tpu.dot_dimension_numbers<[1], [0], [0], [1], [0, 0, 1, 1], [], []>} : vector<16x16xbf16>, vector<16x128xbf16>, vector<16x128xf32> -> vector<16x128xf32>
    %c0_3 = arith.constant 0 : index
    %c0_4 = arith.constant 0 : index
    %3 = vector.load %arg3[%c0_3, %c0_4] : memref<1x128xf32, #tpu.memory_space<vmem>>, vector<1x128xf32>
    %4 = vector.broadcast %3 : vector<1x128xf32> to vector<16x128xf32>
    %5 = arith.addf %2, %4 : vector<16x128xf32>
    %cst_5 = arith.constant 3.000000e+00 : f32
    %6 = vector.broadcast %cst_5 : f32 to vector<16x128xf32>
    %7 = arith.addf %5, %6 : vector<16x128xf32>
    %cst_6 = arith.constant 0.000000e+00 : f32
    %cst_7 = arith.constant 6.000000e+00 : f32
    %8 = vector.broadcast %cst_6 : f32 to vector<16x128xf32>
    %9 = arith.maximumf %8, %7 : vector<16x128xf32>
    %10 = vector.broadcast %cst_7 : f32 to vector<16x128xf32>
    %11 = arith.minimumf %10, %9 : vector<16x128xf32>
    %cst_8 = arith.constant 0.166666672 : f32
    %12 = vector.broadcast %cst_8 : f32 to vector<16x128xf32>
    %13 = arith.mulf %11, %12 : vector<16x128xf32>
    %14 = arith.mulf %13, %5 : vector<16x128xf32>
    %15 = arith.truncf %14 : vector<16x128xf32> to vector<16x128xbf16>
    %c0_9 = arith.constant 0 : index
    %c0_10 = arith.constant 0 : index
    %16 = vector.load %arg12[%c0_9, %c0_10] : memref<16x256xbf16, #tpu.memory_space<vmem>>, vector<16x128xbf16>
    tpu.vector_store %arg12[%c0_9, %c0_10], %15 {strides = array<i32>} : memref<16x256xbf16, #tpu.memory_space<vmem>>, vector<16x128xbf16>,
    %c0_11 = arith.constant 0 : index
    %c0_12 = arith.constant 0 : index
    %17 = vector.load %arg4[%c0_11, %c0_12] : memref<128x128xbf16, #tpu.memory_space<vmem>>, vector<128x128xbf16>
    %cst_13 = arith.constant dense<0.000000e+00> : vector<16x128xf32>
    %18 = tpu.matmul %15, %17, %cst_13 {dimension_numbers = #tpu.dot_dimension_numbers<[1], [0], [0], [1], [0, 0, 1, 1], [], []>} : vector<16x128xbf16>, vector<128x128xbf16>, vector<16x128xf32> -> vector<16x128xf32>
    %c0_14 = arith.constant 0 : index
    %c0_15 = arith.constant 0 : index
    %19 = vector.load %arg5[%c0_14, %c0_15] : memref<1x128xf32, #tpu.memory_space<vmem>>, vector<1x128xf32>
    %20 = vector.broadcast %19 : vector<1x128xf32> to vector<16x128xf32>
    %21 = arith.addf %18, %20 : vector<16x128xf32>
    %cst_16 = arith.constant 3.000000e+00 : f32
    %22 = vector.broadcast %cst_16 : f32 to vector<16x128xf32>
    %23 = arith.addf %21, %22 : vector<16x128xf32>
    %cst_17 = arith.constant 0.000000e+00 : f32
    %cst_18 = arith.constant 6.000000e+00 : f32
    %24 = vector.broadcast %cst_17 : f32 to vector<16x128xf32>
    %25 = arith.maximumf %24, %23 : vector<16x128xf32>
    %26 = vector.broadcast %cst_18 : f32 to vector<16x128xf32>
    %27 = arith.minimumf %26, %25 : vector<16x128xf32>
    %cst_19 = arith.constant 0.166666672 : f32
    %28 = vector.broadcast %cst_19 : f32 to vector<16x128xf32>
    %29 = arith.mulf %27, %28 : vector<16x128xf32>
    %30 = arith.mulf %29, %21 : vector<16x128xf32>
    %31 = arith.truncf %30 : vector<16x128xf32> to vector<16x128xbf16>
    %c0_20 = arith.constant 0 : index
    %c128 = arith.constant 128 : index
    %32 = vector.load %arg12[%c0_20, %c128] : memref<16x256xbf16, #tpu.memory_space<vmem>>, vector<16x128xbf16>
    tpu.vector_store %arg12[%c0_20, %c128], %31 {strides = array<i32>} : memref<16x256xbf16, #tpu.memory_space<vmem>>, vector<16x128xbf16>,
    %c0_21 = arith.constant 0 : index
    %c0_22 = arith.constant 0 : index
    %33 = vector.load %arg12[%c0_21, %c0_22] : memref<16x256xbf16, #tpu.memory_space<vmem>>, vector<16x256xbf16>
    %c0_23 = arith.constant 0 : index
    %c0_24 = arith.constant 0 : index
    %34 = vector.load %arg6[%c0_23, %c0_24] : memref<256x128xbf16, #tpu.memory_space<vmem>>, vector<256x128xbf16>
    %cst_25 = arith.constant dense<0.000000e+00> : vector<16x128xf32>
    %35 = tpu.matmul %33, %34, %cst_25 {dimension_numbers = #tpu.dot_dimension_numbers<[1], [0], [0], [1], [0, 0, 1, 1], [], []>} : vector<16x256xbf16>, vector<256x128xbf16>, vector<16x128xf32> -> vector<16x128xf32>
    %c0_26 = arith.constant 0 : index
    %c0_27 = arith.constant 0 : index
    %36 = vector.load %arg7[%c0_26, %c0_27] : memref<1x128xf32, #tpu.memory_space<vmem>>, vector<1x128xf32>
    %37 = vector.broadcast %36 : vector<1x128xf32> to vector<16x128xf32>
    %38 = arith.addf %35, %37 : vector<16x128xf32>
    %cst_28 = arith.constant 3.000000e+00 : f32
    %39 = vector.broadcast %cst_28 : f32 to vector<16x128xf32>
    %40 = arith.addf %38, %39 : vector<16x128xf32>
    %cst_29 = arith.constant 0.000000e+00 : f32
    %cst_30 = arith.constant 6.000000e+00 : f32
    %41 = vector.broadcast %cst_29 : f32 to vector<16x128xf32>
    %42 = arith.maximumf %41, %40 : vector<16x128xf32>
    %43 = vector.broadcast %cst_30 : f32 to vector<16x128xf32>
    %44 = arith.minimumf %43, %42 : vector<16x128xf32>
    %cst_31 = arith.constant 0.166666672 : f32
    %45 = vector.broadcast %cst_31 : f32 to vector<16x128xf32>
    %46 = arith.mulf %44, %45 : vector<16x128xf32>
    %47 = arith.mulf %46, %38 : vector<16x128xf32>
    %48 = arith.truncf %47 : vector<16x128xf32> to vector<16x128xbf16>
    %c0_32 = arith.constant 0 : index
    %c0_33 = arith.constant 0 : index
    %49 = vector.load %arg8[%c0_32, %c0_33] : memref<256x128xbf16, #tpu.memory_space<vmem>>, vector<256x128xbf16>
    %cst_34 = arith.constant dense<0.000000e+00> : vector<16x128xf32>
    %50 = tpu.matmul %33, %49, %cst_34 {dimension_numbers = #tpu.dot_dimension_numbers<[1], [0], [0], [1], [0, 0, 1, 1], [], []>} : vector<16x256xbf16>, vector<256x128xbf16>, vector<16x128xf32> -> vector<16x128xf32>
    %c0_35 = arith.constant 0 : index
    %c0_36 = arith.constant 0 : index
    %51 = vector.load %arg9[%c0_35, %c0_36] : memref<128x128xbf16, #tpu.memory_space<vmem>>, vector<128x128xbf16>
    %cst_37 = arith.constant dense<0.000000e+00> : vector<16x128xf32>
    %52 = tpu.matmul %48, %51, %cst_37 {dimension_numbers = #tpu.dot_dimension_numbers<[1], [0], [0], [1], [0, 0, 1, 1], [], []>} : vector<16x128xbf16>, vector<128x128xbf16>, vector<16x128xf32> -> vector<16x128xf32>
    %53 = arith.addf %50, %52 : vector<16x128xf32>
    %c0_38 = arith.constant 0 : index
    %c0_39 = arith.constant 0 : index
    %54 = vector.load %arg10[%c0_38, %c0_39] : memref<1x128xf32, #tpu.memory_space<vmem>>, vector<1x128xf32>
    %55 = vector.broadcast %54 : vector<1x128xf32> to vector<16x128xf32>
    %56 = arith.addf %53, %55 : vector<16x128xf32>
    %57 = math.tanh %56 : vector<16x128xf32>
    %58 = arith.truncf %57 : vector<16x128xf32> to vector<16x128xbf16>
    %c0_40 = arith.constant 0 : index
    %c0_41 = arith.constant 0 : index
    %59 = vector.load %arg11[%c0_40, %c0_41] : memref<16x128xbf16, #tpu.memory_space<vmem>>, vector<16x128xbf16>
    tpu.vector_store %arg11[%c0_40, %c0_41], %58 {strides = array<i32>} : memref<16x128xbf16, #tpu.memory_space<vmem>>, vector<16x128xbf16>,
    return
  }
  func.func @transform_0(%arg0: i32) -> (i32, i32) {
    %c0_i32 = arith.constant 0 : i32
    %c0_i32_0 = arith.constant 0 : i32
    return %arg0, %c0_i32 : i32, i32
  }
  func.func @transform_1(%arg0: i32) -> (i32, i32) {
    %c0_i32 = arith.constant 0 : i32
    %c0_i32_0 = arith.constant 0 : i32
    %c0_i32_1 = arith.constant 0 : i32
    return %c0_i32, %c0_i32_0 : i32, i32
  }
  func.func @transform_2(%arg0: i32) -> (i32, i32) {
    %c0_i32 = arith.constant 0 : i32
    %c0_i32_0 = arith.constant 0 : i32
    %c0_i32_1 = arith.constant 0 : i32
    return %c0_i32, %c0_i32_0 : i32, i32
  }
  func.func @transform_3(%arg0: i32) -> (i32, i32) {
    %c0_i32 = arith.constant 0 : i32
    %c0_i32_0 = arith.constant 0 : i32
    %c0_i32_1 = arith.constant 0 : i32
    return %c0_i32, %c0_i32_0 : i32, i32
  }
  func.func @transform_4(%arg0: i32) -> (i32, i32) {
    %c0_i32 = arith.constant 0 : i32
    %c0_i32_0 = arith.constant 0 : i32
    %c0_i32_1 = arith.constant 0 : i32
    return %c0_i32, %c0_i32_0 : i32, i32
  }
  func.func @transform_5(%arg0: i32) -> (i32, i32) {
    %c0_i32 = arith.constant 0 : i32
    %c0_i32_0 = arith.constant 0 : i32
    %c0_i32_1 = arith.constant 0 : i32
    return %c0_i32, %c0_i32_0 : i32, i32
  }
  func.func @transform_6(%arg0: i32) -> (i32, i32) {
    %c0_i32 = arith.constant 0 : i32
    %c0_i32_0 = arith.constant 0 : i32
    %c0_i32_1 = arith.constant 0 : i32
    return %c0_i32, %c0_i32_0 : i32, i32
  }
  func.func @transform_7(%arg0: i32) -> (i32, i32) {
    %c0_i32 = arith.constant 0 : i32
    %c0_i32_0 = arith.constant 0 : i32
    %c0_i32_1 = arith.constant 0 : i32
    return %c0_i32, %c0_i32_0 : i32, i32
  }
  func.func @transform_8(%arg0: i32) -> (i32, i32) {
    %c0_i32 = arith.constant 0 : i32
    %c0_i32_0 = arith.constant 0 : i32
    %c0_i32_1 = arith.constant 0 : i32
    return %c0_i32, %c0_i32_0 : i32, i32
  }
  func.func @transform_9(%arg0: i32) -> (i32, i32) {
    %c0_i32 = arith.constant 0 : i32
    %c0_i32_0 = arith.constant 0 : i32
    %c0_i32_1 = arith.constant 0 : i32
    return %c0_i32, %c0_i32_0 : i32, i32
  }
  func.func @transform_10(%arg0: i32) -> (i32, i32) {
    %c0_i32 = arith.constant 0 : i32
    %c0_i32_0 = arith.constant 0 : i32
    return %arg0, %c0_i32 : i32, i32
  }
}

</mosaic_0001>

<bundles_post_ra>
// kernel: actor_forward.1
= control target key start
LH: loop header
LB: loop body
LE: loop exit
PB: predicated region body
PF: predicated region fallthrough
CT: control target
= control target key end

     0   :  { %15 = vsyncpa [#allocation4], 0  ;;  %s1301_s0 = inlined_call_operand.vmem [shape: bf16[16,16], index: 0, kind: input, shape index: {}]   ;;  %s1302_s1 = inlined_call_operand.vmem [shape: bf16[16,128], index: 1, kind: input, shape index: {}]   ;;  %s1303_s2 = inlined_call_operand.vmem [shape: f32[1,128], index: 2, kind: input, shape index: {}]   ;;  %s1304_s3 = inlined_call_operand.hbm [shape: bf16[128,128], index: 3, kind: input, shape index: {}]   ;;  %s1305_s4 = inlined_call_operand.vmem [shape: f32[1,128], index: 4, kind: input, shape index: {}]   ;;  %s1306_s5 = inlined_call_operand.hbm [shape: bf16[256,128], index: 5, kind: input, shape index: {}]   ;;  %s1307_s6 = inlined_call_operand.vmem [shape: f32[1,128], index: 6, kind: input, shape index: {}]   ;;  %s1308_s7 = inlined_call_operand.hbm [shape: bf16[256,128], index: 7, kind: input, shape index: {}]   ;;  %s1309_s8 = inlined_call_operand.hbm [shape: bf16[128,128], index: 8, kind: input, shape index: {}]   ;;  %s1310_s9 = inlined_call_operand.vmem [shape: f32[1,128], index: 9, kind: input, shape index: {}]   ;;  %s1311_s10 = inlined_call_operand.vmem [shape: bf16[16,128], index: 10, kind: output, shape index: {}]  }
   0x1   :  { %16 = vsyncpa [#allocation6], 0 }
   0x2   :  { %17 = vsyncpa [#allocation9], 0  ;;  %s1115_s13 = smov [#allocation5]   ;;  %s1116_s15 = smov [#allocation3]  }
   0x3   :  { %s43_s14 = sshll.u32 %s1115_s13, 4  ;;  %s29_s16 = sshll.u32 %s1116_s15, 4  ;;  %s44_s14 = int_to_ptr.vmem [resolvable:$true] %s43_s14  ;;  %s1178_s16 = int_to_ptr.vmem [resolvable:$true] %s29_s16 }
   0x4   :  { %s1021_s19 = scalar_lea.hbm %s1306_s5, 2048 }
   0x5   :  { %p1022_p0 = scmp.ne.s32.totalorder %s1306_s5, %s1021_s19  ;;  %p1025_p1 = scmp.lt.u32.totalorder %s1021_s19, %s1306_s5 }
   0x7   :  { %p1027_p2 = pnand %p1025_p1, %p1022_p0 }
   0x9   :  { %1030 = shalt.err (!%p1027_p2)
}
   0xa   :  { %s1031_s24 = scalar_lea.vmem %s44_s14, 2048  ;;  %p1036_p4 = scmp.lt.s32.totalorder %s44_s14, %s44_s14 }
   0xb   :  { %p1032_p3 = scmp.ne.s32.totalorder %s44_s14, %s1031_s24  ;;  %p1037_p5 = scmp.lt.s32.totalorder %s1031_s24, %s1031_s24 }
   0xd   :  { %p1038_p6 = por %p1037_p5, %p1036_p4 }
   0xf   :  { %p1039_p7 = pnand %p1038_p6, %p1032_p3 }
  0x11   :  { %1042 = shalt.err (!%p1039_p7)
}
  0x12   :  { %s1117_s25 = smov 64   ;;  %s1118_s26 = smov 4  }
  0x13   :  { %49 = dma.hbm_to_vmem [thread:$0]  %s1306_s5, 2048, %s44_s14, [#allocation6], %s1117_s25, %s1117_s25, %s1118_s26  }
  0x14   :  { %s1043_s11 = scalar_lea.hbm %s1304_s3, 1024 }
  0x15   :  { %p1044_p8 = scmp.ne.s32.totalorder %s1304_s3, %s1043_s11  ;;  %p1047_p9 = scmp.lt.u32.totalorder %s1043_s11, %s1304_s3 }
  0x17   :  { %p1049_p10 = pnand %p1047_p9, %p1044_p8 }
  0x19   :  { %1052 = shalt.err (!%p1049_p10)
}
  0x1a   :  { %s1053_s18 = scalar_lea.vmem %s1178_s16, 1024  ;;  %p1058_p12 = scmp.lt.s32.totalorder %s1178_s16, %s1178_s16 }
  0x1b   :  { %p1054_p11 = scmp.ne.s32.totalorder %s1178_s16, %s1053_s18  ;;  %p1059_p13 = scmp.lt.s32.totalorder %s1053_s18, %s1053_s18 }
  0x1d   :  { %p1060_p0 = por %p1059_p13, %p1058_p12 }
  0x1f   :  { %p1061_p1 = pnand %p1060_p0, %p1054_p11 }
  0x21   :  { %1064 = shalt.err (!%p1061_p1)
}
  0x22   :  { %35 = dma.hbm_to_vmem [thread:$0]  %s1304_s3, 1024, %s1178_s16, [#allocation4], %s1117_s25, %s1117_s25, %s1118_s26  }
  0x23   :  { %s1119_s19 = smov [#allocation7]   ;;  %s1120_s21 = smov [#allocation8]  }
  0x24   :  { %s57_s20 = sshll.u32 %s1119_s19, 4  ;;  %s69_s22 = sshll.u32 %s1120_s21, 4  ;;  %s58_s20 = int_to_ptr.vmem [resolvable:$true] %s57_s20  ;;  %s1215_s22 = int_to_ptr.vmem [resolvable:$true] %s69_s22 }
  0x25   :  { %s1065_s27 = scalar_lea.hbm %s1308_s7, 2048 }
  0x26   :  { %p1066_p2 = scmp.ne.s32.totalorder %s1308_s7, %s1065_s27  ;;  %p1069_p3 = scmp.lt.u32.totalorder %s1065_s27, %s1308_s7 }
  0x28   :  { %p1071_p4 = pnand %p1069_p3, %p1066_p2 }
  0x2a   :  { %1074 = shalt.err (!%p1071_p4)
}
  0x2b   :  { %s1075_s3 = scalar_lea.vmem %s58_s20, 2048  ;;  %p1080_p6 = scmp.lt.s32.totalorder %s58_s20, %s58_s20 }
  0x2c   :  { %p1076_p5 = scmp.ne.s32.totalorder %s58_s20, %s1075_s3  ;;  %p1081_p7 = scmp.lt.s32.totalorder %s1075_s3, %s1075_s3 }
  0x2e   :  { %p1082_p8 = por %p1081_p7, %p1080_p6 }
  0x30   :  { %p1083_p9 = pnand %p1082_p8, %p1076_p5 }
  0x32   :  { %1086 = shalt.err (!%p1083_p9)
}
  0x33   :  { %63 = dma.hbm_to_vmem [thread:$0]  %s1308_s7, 2048, %s58_s20, [#allocation6], %s1117_s25, %s1117_s25, %s1118_s26  }
  0x34   :  { %s1087_s17 = scalar_lea.hbm %s1309_s8, 1024 }
  0x35   :  { %p1088_p10 = scmp.ne.s32.totalorder %s1309_s8, %s1087_s17  ;;  %p1091_p11 = scmp.lt.u32.totalorder %s1087_s17, %s1309_s8 }
  0x37   :  { %p1093_p12 = pnand %p1091_p11, %p1088_p10 }
  0x39   :  { %1096 = shalt.err (!%p1093_p12)
}
  0x3a   :  { %s1097_s21 = scalar_lea.vmem %s1215_s22, 1024  ;;  %p1102_p0 = scmp.lt.s32.totalorder %s1215_s22, %s1215_s22 }
  0x3b   :  { %p1098_p13 = scmp.ne.s32.totalorder %s1215_s22, %s1097_s21  ;;  %p1103_p1 = scmp.lt.s32.totalorder %s1097_s21, %s1097_s21 }
  0x3d   :  { %p1104_p2 = por %p1103_p1, %p1102_p0 }
  0x3f   :  { %p1105_p3 = pnand %p1104_p2, %p1098_p13 }
  0x41   :  { %1108 = shalt.err (!%p1105_p3)
}
  0x42   :  { %75 = dma.hbm_to_vmem [thread:$0]  %s1309_s8, 1024, %s1215_s22, [#allocation9], %s1117_s25, %s1117_s25, %s1118_s26  }
  0x43   :  { %1109 = dma.done.wait [#allocation4], 1024  }
  0x44   :  { %1110 = vsyncadd [#allocation4], 4294966272 }
  0x45   :  { %1111 = dma.done.wait [#allocation6], 4096  }
  0x46   :  { %1112 = vsyncadd [#allocation6], 4294963200 }
  0x47   :  { %1113 = dma.done.wait [#allocation9], 1024  }
  0x48   :  { %1114 = vsyncadd [#allocation9], 4294966272  ;;  %v1121_v0 = vmov 0.0   ;;  %vm1122_vm0 = vmmov 0   ;;  %v967_v1 = vld [vmem:[%s1302_s1] sm:$0xff]   ;;  %vm113_vm1 = vcmask 130048  }
  0x49   :  { %913 = vmatprep.subr.bf16.mxu0 %v1121_v0  ;;  %915 = vmatprep.mubr.msk.bf16.mxu0 %vm1122_vm0, %v1121_v0  ;;  %v968_v2 = vld [vmem:[%s1301_s0] sm:$0xff]   ;;  %v970_v4 = vld [vmem:[#allocation3 + $0x8] sm:$0xff]   ;;  %v971_v5 = vld [vmem:[#allocation3 + $0x10] sm:$0xff]  }
  0x4a   :  { %919 = vmatprep.subr.bf16.mxu1 %v1121_v0  ;;  %935 = vmatprep.mubr.msk.bf16.mxu1 %vm1122_vm0, %v1121_v0  ;;  %v969_v3 = vld [vmem:[#allocation3] sm:$0xff]   ;;  %v972_v6 = vld [vmem:[#allocation3 + $0x18] sm:$0xff]   ;;  %v974_v8 = vld [vmem:[#allocation3 + $0x28] sm:$0xff]  }
  0x4b   :  { %914 = vmatpush3.bf16.msra.mxu0 %v967_v1  ;;  %920 = vmatpush3.bf16.msra.mxu1 %v969_v3  ;;  %v973_v7 = vld [vmem:[#allocation3 + $0x20] sm:$0xff]   ;;  %v975_v9 = vld [vmem:[#allocation3 + $0x30] sm:$0xff]   ;;  %v976_v10 = vld [vmem:[#allocation3 + $0x38] sm:$0xff]  }
  0x4c   :  { %921 = vmatprep.subr.bf16.mxu1 %v1121_v0  ;;  %v977_v11 = vld [vmem:[#allocation5 + $0x40] sm:$0xff]   ;;  %v979_v13 = vld [vmem:[#allocation5 + $0x48] sm:$0xff]   ;;  %v981_v15 = vld [vmem:[#allocation5 + $0x50] sm:$0xff]  }
  0x4d   :  { %v978_v12 = vld [vmem:[#allocation5] sm:$0xff]   ;;  %860 = vmatprep.subr.bf16.mxu0 %v977_v11  ;;  %v980_v14 = vld [vmem:[#allocation5 + $0x8] sm:$0xff]   ;;  %v982_v16 = vld [vmem:[#allocation5 + $0x10] sm:$0xff]  }
  0x4e   :  { %916 = vmatmul.mubr.msk.bf16.vlgmr.msra.gmra.mrb[0].mxu0 %vm113_vm1, %v968_v2  ;;  %v983_v17 = vld [vmem:[#allocation5 + $0x58] sm:$0xff]   ;;  %v785_v19 = vld [vmem:[%s1303_s2] ss:$0 sm:$0xff]  ;;  %v987_v39 = vld [vmem:[#allocation5 + $0x68] sm:$0xff]  }
  0x4f   :  { %922 = vmatpush3.bf16.msra.mxu1 %v970_v4  ;;  %861 = vmatpush3.bf16.msra.mxu0 %v978_v12  ;;  %v984_v18 = vld [vmem:[#allocation5 + $0x18] sm:$0xff]   ;;  %v985_v37 = vld [vmem:[#allocation5 + $0x60] sm:$0xff]   ;;  %v988_v40 = vld [vmem:[#allocation5 + $0x28] sm:$0xff]  }
  0x50   :  { %923 = vmatprep.subr.bf16.mxu1 %v1121_v0  ;;  %862 = vmatprep.subr.bf16.mxu0 %v979_v13  ;;  %v986_v38 = vld [vmem:[#allocation5 + $0x20] sm:$0xff]   ;;  %v989_v41 = vld [vmem:[#allocation5 + $0x70] sm:$0xff]   ;;  %v991_v43 = vld [vmem:[#allocation5 + $0x78] sm:$0xff]  }
  0x51   :  { %v990_v42 = vld [vmem:[#allocation5 + $0x30] sm:$0xff]   ;;  %v992_v44 = vld [vmem:[#allocation5 + $0x38] sm:$0xff]   ;;  %v993_v45 = vld [vmem:[#allocation7 + $0x40] sm:$0xff]  }
  0x52   :  { %v1009_v46 = vld [vmem:[#allocation8] sm:$0xff]   ;;  %v1010_v47 = vld [vmem:[#allocation8 + $0x8] sm:$0xff]   ;;  %v1011_v48 = vld [vmem:[#allocation8 + $0x10] sm:$0xff]  }
  0x53   :  { %924 = vmatpush3.bf16.msra.mxu1 %v971_v5  ;;  %863 = vmatpush3.bf16.msra.mxu0 %v980_v14  ;;  %v789_v49 = vld [vmem:[%s1305_s4] ss:$0 sm:$0xff]  ;;  %v995_v5 = vld [vmem:[#allocation7 + $0x48] sm:$0xff]  }
  0x54   :  { %925 = vmatprep.subr.bf16.mxu1 %v1121_v0  ;;  %864 = vmatprep.subr.bf16.mxu0 %v981_v15  ;;  %v994_v4 = vld [vmem:[#allocation7] sm:$0xff]   ;;  %v1003_v13 = vld [vmem:[#allocation7 + $0x68] sm:$0xff]   ;;  %v1005_v15 = vld [vmem:[#allocation7 + $0x70] sm:$0xff]  }
  0x55   :  { %v1001_v11 = vld [vmem:[#allocation7 + $0x60] sm:$0xff]   ;;  %v1004_v14 = vld [vmem:[#allocation7 + $0x28] sm:$0xff]  }
  0x56   :  { %v1002_v12 = vld [vmem:[#allocation7 + $0x20] sm:$0xff]  }
  0x57   :  { %926 = vmatpush3.bf16.msra.mxu1 %v972_v6  ;;  %865 = vmatpush3.bf16.msra.mxu0 %v982_v16  ;;  %v996_v6 = vld [vmem:[#allocation7 + $0x8] sm:$0xff]   ;;  %v1006_v16 = vld [vmem:[#allocation7 + $0x30] sm:$0xff]  }
  0x58   :  { %927 = vmatprep.subr.bf16.mxu1 %v1121_v0  ;;  %866 = vmatprep.subr.bf16.mxu0 %v983_v17  ;;  %v1007_v17 = vld [vmem:[#allocation7 + $0x78] sm:$0xff]  }
  0x5b   :  { %928 = vmatpush3.bf16.msra.mxu1 %v973_v7  ;;  %867 = vmatpush3.bf16.msra.mxu0 %v984_v18  ;;  %v997_v7 = vld [vmem:[#allocation7 + $0x50] sm:$0xff]   ;;  %v1008_v18 = vld [vmem:[#allocation7 + $0x38] sm:$0xff]  }
  0x5c   :  { %929 = vmatprep.subr.bf16.mxu1 %v1121_v0  ;;  %868 = vmatprep.subr.bf16.mxu0 %v985_v37 }
  0x5f   :  { %930 = vmatpush3.bf16.msra.mxu1 %v974_v8  ;;  %869 = vmatpush3.bf16.msra.mxu0 %v986_v38  ;;  %v998_v8 = vld [vmem:[#allocation7 + $0x10] sm:$0xff]  }
  0x60   :  { %931 = vmatprep.subr.bf16.mxu1 %v1121_v0  ;;  %870 = vmatprep.subr.bf16.mxu0 %v987_v39 }
  0x63   :  { %932 = vmatpush3.bf16.msra.mxu1 %v975_v9  ;;  %871 = vmatpush3.bf16.msra.mxu0 %v988_v40  ;;  %v999_v9 = vld [vmem:[#allocation7 + $0x58] sm:$0xff]  }
  0x64   :  { %933 = vmatprep.subr.bf16.mxu1 %v1121_v0  ;;  %872 = vmatprep.subr.bf16.mxu0 %v989_v41 }
  0x67   :  { %934 = vmatpush3.bf16.msra.mxu1 %v976_v10  ;;  %873 = vmatpush3.bf16.msra.mxu0 %v990_v42  ;;  %v1000_v10 = vld [vmem:[#allocation7 + $0x18] sm:$0xff]  }
  0x68   :  { %939 = vmatprep.subr.bf16.mxu1 %v1121_v0  ;;  %874 = vmatprep.subr.bf16.mxu0 %v991_v43 }
  0x6b   :  { %875 = vmatpush3.bf16.msra.mxu0 %v992_v44 }
  0x6c   :  { %891 = vmatprep.subr.bf16.mxu0 %v993_v45 }
 0x121   :  { %v151_v20 = vpop.f32.mrb[0].mxu0 }
 0x122   :  { %v152_v21 = vadd.f32 %v785_v19, %v151_v20  ;;  %v917_v22 = vpop.f32.mrb[1].mxu0  ;;  %v1013_v20 = vld [vmem:[#allocation8 + $0x20] sm:$0xff]  }
 0x123   :  { %v154_v23 = vpop.f32.mrb[2].mxu0  ;;  %v1015_v22 = vld [vmem:[#allocation8 + $0x30] sm:$0xff]  }
 0x124   :  { %v158_v24 = vadd.f32 3.0, %v152_v21  ;;  %v155_v25 = vadd.f32 %v785_v19, %v154_v23  ;;  %v918_v26 = vpop.f32.mrb[3].mxu0  ;;  %v1012_v19 = vld [vmem:[#allocation8 + $0x18] sm:$0xff]  }
 0x125   :  { %v1016_v23 = vld [vmem:[#allocation8 + $0x38] sm:$0xff]  }
 0x126   :  { %v160_v27 = vmax.f32 %v158_v24, 0.0  ;;  %v159_v28 = vadd.f32 3.0, %v155_v25 }
 0x128   :  { %v162_v29 = vmin.f32 %v160_v27, 6.0  ;;  %v161_v30 = vmax.f32 %v159_v28, 0.0 }
 0x12a   :  { %v164_v31 = vmul.f32 0.16666667, %v162_v29  ;;  %v163_v32 = vmin.f32 %v161_v30, 6.0 }
 0x12c   :  { %v165_v33 = vmul.f32 0.16666667, %v163_v32  ;;  %v166_v34 = vmul.f32 %v164_v31, %v152_v21  ;;  %v1014_v21 = vld [vmem:[#allocation8 + $0x28] sm:$0xff]  }
 0x12e   :  { %v167_v35 = vmul.f32 %v165_v33, %v155_v25  ;;  %v798_v25 = vld [vmem:[%s1307_s6] ss:$0 sm:$0xff] }
 0x130   :  { %v1275_v36 = vpack.c.bf16 %v167_v35, %v166_v34 }
 0x132   :  { %936 = vmatmul.mubr.bf16.vlgmr.msra.gmra.mrb[0].mxu1 %v1275_v36 }
 0x133   :  { %955 = vmatprep.mubr.msk.bf16.mxu1 %vm1122_vm0, %v1121_v0  ;;  %940 = vmatpush3.bf16.msra.mxu1 %v1009_v46 }
 0x134   :  { %941 = vmatprep.subr.bf16.mxu1 %v1121_v0 }
 0x137   :  { %942 = vmatpush3.bf16.msra.mxu1 %v1010_v47 }
 0x138   :  { %943 = vmatprep.subr.bf16.mxu1 %v1121_v0 }
 0x13b   :  { %944 = vmatpush3.bf16.msra.mxu1 %v1011_v48 }
 0x13c   :  { %945 = vmatprep.subr.bf16.mxu1 %v1121_v0 }
 0x13f   :  { %946 = vmatpush3.bf16.msra.mxu1 %v1012_v19 }
 0x140   :  { %947 = vmatprep.subr.bf16.mxu1 %v1121_v0 }
 0x143   :  { %948 = vmatpush3.bf16.msra.mxu1 %v1013_v20 }
 0x144   :  { %949 = vmatprep.subr.bf16.mxu1 %v1121_v0 }
 0x147   :  { %950 = vmatpush3.bf16.msra.mxu1 %v1014_v21 }
 0x148   :  { %951 = vmatprep.subr.bf16.mxu1 %v1121_v0 }
 0x14b   :  { %952 = vmatpush3.bf16.msra.mxu1 %v1015_v22 }
 0x14c   :  { %953 = vmatprep.subr.bf16.mxu1 %v1121_v0 }
 0x14f   :  { %954 = vmatpush3.bf16.msra.mxu1 %v1016_v23 }
 0x205   :  { %v275_v50 = vpop.f32.mrb[0].mxu1 }
 0x206   :  { %v276_v51 = vadd.f32 %v789_v49, %v275_v50  ;;  %v937_v52 = vpop.f32.mrb[1].mxu1  ;;  %v839_v50 = vld [vmem:[%s1310_s9] ss:$0 sm:$0xff] }
 0x207   :  { %v278_v53 = vpop.f32.mrb[2].mxu1 }
 0x208   :  { %v282_v54 = vadd.f32 3.0, %v276_v51  ;;  %v279_v55 = vadd.f32 %v789_v49, %v278_v53  ;;  %v938_v56 = vpop.f32.mrb[3].mxu1 }
 0x20a   :  { %v284_v57 = vmax.f32 %v282_v54, 0.0  ;;  %v283_v58 = vadd.f32 3.0, %v279_v55 }
 0x20c   :  { %v286_v59 = vmin.f32 %v284_v57, 6.0  ;;  %v285_v60 = vmax.f32 %v283_v58, 0.0 }
 0x20e   :  { %v288_v61 = vmul.f32 0.16666667, %v286_v59  ;;  %v287_v62 = vmin.f32 %v285_v60, 6.0 }
 0x210   :  { %v289_v63 = vmul.f32 0.16666667, %v287_v62  ;;  %v290_v1 = vmul.f32 %v288_v61, %v276_v51 }
 0x212   :  { %v291_v2 = vmul.f32 %v289_v63, %v279_v55 }
 0x214   :  { %v292_v3 = vpack.c.bf16 %v291_v2, %v290_v1 }
 0x216   :  { %463 = vmatprep.mubr.bf16.mxu0 %v292_v3 }
 0x217   :  { %464 = vmatmul.mubr.bf16.vlgmr.msra.gmra.mrb[4].mxu0 %v1275_v36 }
 0x218   :  { %892 = vmatpush3.bf16.msra.mxu0 %v994_v4  ;;  %748 = vmatprep.mubr.bf16.mxu0 %v292_v3 }
 0x219   :  { %893 = vmatprep.subr.bf16.mxu0 %v995_v5 }
 0x21c   :  { %894 = vmatpush3.bf16.msra.mxu0 %v996_v6 }
 0x21d   :  { %895 = vmatprep.subr.bf16.mxu0 %v997_v7 }
 0x220   :  { %896 = vmatpush3.bf16.msra.mxu0 %v998_v8 }
 0x221   :  { %897 = vmatprep.subr.bf16.mxu0 %v999_v9 }
 0x224   :  { %898 = vmatpush3.bf16.msra.mxu0 %v1000_v10 }
 0x225   :  { %899 = vmatprep.subr.bf16.mxu0 %v1001_v11 }
 0x228   :  { %900 = vmatpush3.bf16.msra.mxu0 %v1002_v12 }
 0x229   :  { %901 = vmatprep.subr.bf16.mxu0 %v1003_v13 }
 0x22c   :  { %902 = vmatpush3.bf16.msra.mxu0 %v1004_v14 }
 0x22d   :  { %903 = vmatprep.subr.bf16.mxu0 %v1005_v15 }
 0x230   :  { %904 = vmatpush3.bf16.msra.mxu0 %v1006_v16 }
 0x231   :  { %905 = vmatprep.subr.bf16.mxu0 %v1007_v17 }
 0x234   :  { %906 = vmatpush3.bf16.msra.mxu0 %v1008_v18 }
 0x237   :  { %749 = vmatmul.mubr.bf16.vlgmr.msra.gmra.mrb[8].mxu0 %v1275_v36 }
 0x2ea   :  { %v876_v24 = vpop.f32.mrb[4].mxu0 }
 0x2eb   :  { %v877_v26 = vpop.f32.mrb[5].mxu0 }
 0x2ec   :  { %v878_v27 = vadd.f32 %v877_v26, %v876_v24  ;;  %v879_v28 = vpop.f32.mrb[6].mxu0 }
 0x2ed   :  { %v880_v29 = vpop.f32.mrb[7].mxu0 }
 0x2ee   :  { %v466_v30 = vadd.f32 %v878_v27, %v798_v25  ;;  %v881_v31 = vadd.f32 %v880_v29, %v879_v28 }
 0x2f0   :  { %v472_v32 = vadd.f32 3.0, %v466_v30  ;;  %v469_v33 = vadd.f32 %v881_v31, %v798_v25 }
 0x2f2   :  { %v474_v34 = vmax.f32 %v472_v32, 0.0  ;;  %v473_v35 = vadd.f32 3.0, %v469_v33 }
 0x2f4   :  { %v476_v36 = vmin.f32 %v474_v34, 6.0  ;;  %v475_v37 = vmax.f32 %v473_v35, 0.0 }
 0x2f6   :  { %v478_v0 = vmul.f32 0.16666667, %v476_v36  ;;  %v477_v38 = vmin.f32 %v475_v37, 6.0 }
 0x2f8   :  { %v479_v39 = vmul.f32 0.16666667, %v477_v38  ;;  %v480_v40 = vmul.f32 %v478_v0, %v466_v30 }
 0x2fa   :  { %v481_v41 = vmul.f32 %v479_v39, %v469_v33 }
 0x2fc   :  { %v482_v42 = vpack.c.bf16 %v481_v41, %v480_v40 }
 0x2fe   :  { %956 = vmatmul.mubr.bf16.vlgmr.msra.gmra.mrb[4].mxu1 %v482_v42 }
 0x30a   :  { %v907_v43 = vpop.f32.mrb[8].mxu0 }
 0x30b   :  { %v908_v44 = vpop.f32.mrb[9].mxu0 }
 0x30c   :  { %v909_v45 = vadd.f32 %v908_v44, %v907_v43  ;;  %v910_v46 = vpop.f32.mrb[10].mxu0 }
 0x30d   :  { %v911_v47 = vpop.f32.mrb[11].mxu0 }
 0x30e   :  { %v912_v48 = vadd.f32 %v911_v47, %v910_v46 }
 0x3d1   :  { %v613_v49 = vpop.f32.mrb[4].mxu1 }
 0x3d2   :  { %v751_v51 = vadd.f32 %v909_v45, %v613_v49  ;;  %v957_v52 = vpop.f32.mrb[5].mxu1 }
 0x3d3   :  { %v616_v53 = vpop.f32.mrb[6].mxu1 }
 0x3d4   :  { %v764_v54 = vadd.f32 %v839_v50, %v751_v51  ;;  %v754_v55 = vadd.f32 %v912_v48, %v616_v53  ;;  %v958_v56 = vpop.f32.mrb[7].mxu1 }
 0x3d6   :  { %v765_v57 = vadd.f32 %v839_v50, %v754_v55  ;;  %1017 = vtanh.f32 %v764_v54 }
 0x3d8   :  { %1019 = vtanh.f32 %v765_v57 }
 0x3e0   :  { %v1018_v58 = vpop.eup %1017 }
 0x3e2   :  { %v1020_v59 = vpop.eup %1019 }
 0x3e3   :  { %v847_v60 = vpack.c.bf16 %v1020_v59, %v1018_v58 }
 0x3e5   :  { %848 = vst [vmem:[%s1311_s10] sm:$0xff] %v847_v60  }
 0x3e6   :  { %782 = vsyncpa [#allocation4], 1 }
 0x3e7   :  { %783 = vsyncpa [#allocation6], 1 }
 0x3e8   :  { %784 = vsyncpa [#allocation9], 1 }

</bundles_post_ra>
